<compile_context>
chip_gen: v5e
topology: v5e:2x2
jax: 0.10.0
libtpu: 0.0.40
codegen_flags: <defaults>
</compile_context>

<pallas_src>
import functools

import jax
import jax.numpy as jnp
from jax.experimental import pallas as pl
from jax.experimental.pallas import tpu as pltpu


def _locked_dropout_kernel(seed_ref, x_ref, o_ref, *,
                           keep_threshold, inv_keep, block_rows, block_cols):
    rows, cols = x_ref.shape

    # Global element coordinates for this tile (offsets from the grid step),
    # built as thin vectors so the expensive u32 multiplies run on (rows,1)
    # and (1,cols) instead of the full (rows,cols) tile.
    row_ids = (jax.lax.broadcasted_iota(jnp.int32, (rows, 1), 0)
               + pl.program_id(0) * block_rows)
    col_ids = (jax.lax.broadcasted_iota(jnp.int32, (1, cols), 1)
               + pl.program_id(1) * block_cols)

    r = row_ids.astype(jnp.uint32) * jnp.uint32(0x9E3779B9)                # (rows,1)
    c = (col_ids.astype(jnp.uint32) * jnp.uint32(0x85EBCA6B)
         + seed_ref[0].astype(jnp.uint32))                                 # (1,cols)

    # Counter-based hash of (seed,row,col): broadcast-add + one-multiply
    # xorshift finalizer.  Pure 32-bit VPU integer ops; tiling-invariant.
    h = r + c                                                              # (rows,cols)
    h = h ^ (h >> 16)
    h = h * jnp.uint32(0x7FEB352D)
    h = h ^ (h >> 15)

    # Bernoulli(keep_prob) via integer threshold compare (no float uniform).
    keep = h < jnp.uint32(keep_threshold)

    x = x_ref[...]
    if jnp.dtype(x_ref.dtype).itemsize < 4:
        # Apply the inverted-dropout scale in f32 for low-precision inputs
        # (avoids a systematic bias when 1/(1-p) is not representable), then
        # round once back to the storage dtype.
        o_ref[...] = jnp.where(
            keep, x.astype(jnp.float32) * jnp.float32(inv_keep), 0.0
        ).astype(o_ref.dtype)
    else:
        o_ref[...] = jnp.where(keep, x * jnp.asarray(inv_keep, dtype=x.dtype),
                               jnp.zeros((), dtype=x.dtype))


def _choose_blocks(B, T, itemsize, target_bytes=4 * 1024 * 1024):
    """Pick (row_block, col_block): lane-dense, ~4 MiB per buffer, >=2 row steps."""
    # --- column block: full width, or a multiple of 128 lanes when an 8-row
    # stripe of the full width would blow the per-buffer budget.
    if T % 128 != 0 or 8 * T * itemsize <= target_bytes:
        col_block = T
    else:
        col_block = max(128, (target_bytes // (8 * itemsize)) // 128 * 128)
        col_block = min(col_block, T)

    # --- row block: largest multiple of 8 within budget.
    if B <= 8:
        row_block = B
    else:
        budget_rows = (target_bytes // (col_block * itemsize)) // 8 * 8
        row_block = int(min(max(8, budget_rows), B))
        # Guarantee >= 2 grid steps so both v7x TensorCores get work.
        if row_block >= B and B >= 16:
            row_block = max(8, (B // 2) // 8 * 8)
        # block second-to-last dim must be a multiple of 8 or equal B.
        if row_block % 8 != 0 and row_block != B:
            row_block = max(8, row_block // 8 * 8)
    return row_block, col_block


def locked_dropout_for_attention(x, seed, p=0.75, training=True,
                                 row_block=None, col_block=None):
    """Pallas implementation of LockedDropoutForAttention.forward.

    x:        (B, T) attention weights.
    seed:     int; same seed => same ("locked") mask.
    p:        drop probability (default 0.75, matching the module).
    training: if False, identity (PyTorch eval path).
    """
    if not training or p <= 0.0:
        return x
    if x.ndim != 2:
        raise ValueError("expected 2-D (batch, seq) attention weights")
    if p >= 1.0:
        # Everything is dropped; PyTorch would divide by zero here -- guard.
        return jnp.zeros_like(x)

    B, T = x.shape
    keep_prob = 1.0 - float(p)
    keep_threshold = min(int(round(keep_prob * (1 << 32))), (1 << 32) - 1)
    inv_keep = 1.0 / keep_prob

    itemsize = jnp.dtype(x.dtype).itemsize
    rb, cb = _choose_blocks(B, T, itemsize)
    if row_block is not None:
        rb = int(row_block)
    if col_block is not None:
        cb = int(col_block)
    grid = (pl.cdiv(B, rb), pl.cdiv(T, cb))

    s = int(seed) & 0xFFFFFFFF
    if s >= 1 << 31:
        s -= 1 << 32
    seed_arr = jnp.asarray([s], dtype=jnp.int32)

    kernel = functools.partial(
        _locked_dropout_kernel,
        keep_threshold=keep_threshold,
        inv_keep=inv_keep,
        block_rows=rb,
        block_cols=cb,
    )

    block_bytes = rb * cb * itemsize
    vmem_limit = int(min(48 * 1024 * 1024,
                         max(32 * 1024 * 1024, 12 * block_bytes)))

    return pl.pallas_call(
        kernel,
        out_shape=jax.ShapeDtypeStruct(x.shape, x.dtype),
        grid=grid,
        in_specs=[
            pl.BlockSpec(memory_space=pltpu.MemorySpace.SMEM),   # seed scalar
            pl.BlockSpec((rb, cb), lambda i, j: (i, j)),         # x tile
        ],
        out_specs=pl.BlockSpec((rb, cb), lambda i, j: (i, j)),
        compiler_params=pltpu.CompilerParams(
            dimension_semantics=("parallel", "parallel"),
            vmem_limit_bytes=vmem_limit),
        cost_estimate=pl.CostEstimate(
            flops=20 * B * T,
            transcendentals=0,
            bytes_accessed=2 * B * T * itemsize),
    )(seed_arr, x)


if __name__ == "__main__":
    key = jax.random.PRNGKey(0)
    B, T = 16, 256                      # small (batch, seq) attention weights
    x = jax.random.normal(key, (B, T), dtype=jnp.float32)

    p = 0.75
    out = jax.block_until_ready(locked_dropout_for_attention(x, seed=1234, p=p))

    # Shape/dtype preserved; kept elements equal x/(1-p); dropped are exactly 0;
    # keep fraction roughly (1 - p).
    assert out.shape == x.shape and out.dtype == x.dtype
    kept = out != 0.0
    scaled = x / (1.0 - p)
    assert bool(jnp.allclose(jnp.where(kept, out, scaled), scaled,
                             rtol=1e-6, atol=1e-6))
    keep_frac = float(jnp.mean(kept.astype(jnp.float32)))
    assert 0.05 < keep_frac < 0.55, f"unexpected keep fraction {keep_frac}"

    # Locked behavior: same seed reproduces the identical mask.
    out2 = jax.block_until_ready(locked_dropout_for_attention(x, seed=1234, p=p))
    assert bool(jnp.array_equal(out, out2))
    # Different seed -> different mask.
    out3 = jax.block_until_ready(locked_dropout_for_attention(x, seed=77, p=p))
    assert not bool(jnp.array_equal(out, out3))

    # Tiling invariance: different row/col tilings give bit-identical output.
    full = jax.block_until_ready(
        locked_dropout_for_attention(x, seed=5, p=p, row_block=B, col_block=T))
    tiled = jax.block_until_ready(
        locked_dropout_for_attention(x, seed=5, p=p, row_block=8, col_block=128))
    assert bool(jnp.array_equal(full, tiled))

    # Eval mode is identity.
    out_eval = locked_dropout_for_attention(x, seed=1234, p=p, training=False)
    assert bool(jnp.array_equal(out_eval, x))

    # p == 1.0 guard: everything dropped, no ZeroDivisionError.
    out_all = jax.block_until_ready(locked_dropout_for_attention(x, seed=1, p=1.0))
    assert bool(jnp.all(out_all == 0))

    print("KERNEL_OK")
</pallas_src>

<mosaic_0001>
module attributes {stable_mosaic.version = 11 : i64} {
  func.func @_locked_dropout_kernel(%arg0: i32, %arg1: i32, %arg2: memref<1xi32, #tpu.memory_space<smem>>, %arg3: memref<8x256xf32, #tpu.memory_space<vmem>>, %arg4: memref<8x256xf32, #tpu.memory_space<vmem>>) attributes {dimension_semantics = [#tpu.dimension_semantics<parallel>, #tpu.dimension_semantics<parallel>], iteration_bounds = array<i64: 2, 1>, scalar_prefetch = 0 : i64, scratch_operands = 0 : i64, tpu.core_type = #tpu.core_type<tc>, window_params = [{transform_indices = @transform_0, window_bounds = array<i64: 1>}, {transform_indices = @transform_1, window_bounds = array<i64: 8, 256>}, {transform_indices = @transform_2, window_bounds = array<i64: 8, 256>}]} {
    %0 = tpu.iota {dimensions = array<i32: 0>} : vector<8x1xi32>
    %c8_i32 = arith.constant 8 : i32
    %1 = arith.muli %arg0, %c8_i32 : i32
    %2 = vector.broadcast %1 : i32 to vector<8x1xi32>
    %3 = arith.addi %0, %2 : vector<8x1xi32>
    %4 = tpu.iota {dimensions = array<i32: 1>} : vector<1x256xi32>
    %c256_i32 = arith.constant 256 : i32
    %5 = arith.muli %arg1, %c256_i32 : i32
    %6 = vector.broadcast %5 : i32 to vector<1x256xi32>
    %7 = arith.addi %4, %6 : vector<1x256xi32>
    %c-1640531527_i32 = arith.constant -1640531527 : i32
    %8 = vector.broadcast %c-1640531527_i32 : i32 to vector<8x1xi32>
    %9 = arith.muli %3, %8 : vector<8x1xi32>
    %c-2048144789_i32 = arith.constant -2048144789 : i32
    %10 = vector.broadcast %c-2048144789_i32 : i32 to vector<1x256xi32>
    %11 = arith.muli %7, %10 : vector<1x256xi32>
    %c0 = arith.constant 0 : index
    %12 = memref.load %arg2[%c0] : memref<1xi32, #tpu.memory_space<smem>>
    %13 = vector.broadcast %12 : i32 to vector<1x256xi32>
    %14 = arith.addi %11, %13 : vector<1x256xi32>
    %15 = vector.broadcast %9 : vector<8x1xi32> to vector<8x256xi32>
    %16 = vector.broadcast %14 : vector<1x256xi32> to vector<8x256xi32>
    %17 = arith.addi %15, %16 : vector<8x256xi32>
    %c16_i32 = arith.constant 16 : i32
    %18 = vector.broadcast %c16_i32 : i32 to vector<8x256xi32>
    %19 = arith.shrui %17, %18 : vector<8x256xi32>
    %20 = arith.xori %17, %19 : vector<8x256xi32>
    %c2146121005_i32 = arith.constant 2146121005 : i32
    %21 = vector.broadcast %c2146121005_i32 : i32 to vector<8x256xi32>
    %22 = arith.muli %20, %21 : vector<8x256xi32>
    %c15_i32 = arith.constant 15 : i32
    %23 = vector.broadcast %c15_i32 : i32 to vector<8x256xi32>
    %24 = arith.shrui %22, %23 : vector<8x256xi32>
    %25 = arith.xori %22, %24 : vector<8x256xi32>
    %c1073741824_i32 = arith.constant 1073741824 : i32
    %26 = vector.broadcast %c1073741824_i32 : i32 to vector<8x256xi32>
    %27 = arith.cmpi ult, %25, %26 : vector<8x256xi32>
    %c0_0 = arith.constant 0 : index
    %c0_1 = arith.constant 0 : index
    %28 = vector.load %arg3[%c0_0, %c0_1] : memref<8x256xf32, #tpu.memory_space<vmem>>, vector<8x256xf32>
    %cst = arith.constant 4.000000e+00 : f32
    %29 = vector.broadcast %cst : f32 to vector<8x256xf32>
    %30 = arith.mulf %28, %29 : vector<8x256xf32>
    %cst_2 = arith.constant 0.000000e+00 : f32
    %31 = vector.broadcast %cst_2 : f32 to vector<8x256xf32>
    %32 = arith.select %27, %30, %31 : vector<8x256xi1>, vector<8x256xf32>
    %c0_3 = arith.constant 0 : index
    %c0_4 = arith.constant 0 : index
    %33 = vector.load %arg4[%c0_3, %c0_4] : memref<8x256xf32, #tpu.memory_space<vmem>>, vector<8x256xf32>
    tpu.vector_store %arg4[%c0_3, %c0_4], %32 {strides = array<i32>} : memref<8x256xf32, #tpu.memory_space<vmem>>, vector<8x256xf32>,
    return
  }
  func.func @transform_0(%arg0: i32, %arg1: i32) -> i32 {
    %c0_i32 = arith.constant 0 : i32
    %c0_i32_0 = arith.constant 0 : i32
    return %c0_i32 : i32
  }
  func.func @transform_1(%arg0: i32, %arg1: i32) -> (i32, i32) {
    %c0_i32 = arith.constant 0 : i32
    return %arg0, %arg1 : i32, i32
  }
  func.func @transform_2(%arg0: i32, %arg1: i32) -> (i32, i32) {
    %c0_i32 = arith.constant 0 : i32
    return %arg0, %arg1 : i32, i32
  }
}

</mosaic_0001>

<bundles_post_ra>
// kernel: tpu_custom_call.1
= control target key start
LH: loop header
LB: loop body
LE: loop exit
PB: predicated region body
PF: predicated region fallthrough
CT: control target
= control target key end

     0   :  { %s670_s0 = inlined_call_operand.<no memory space> [shape: s32[1], index: 0, kind: input, shape index: {}]   ;;  %s671_s1 = inlined_call_operand.hbm [shape: f32[16,256], index: 1, kind: input, shape index: {}]   ;;  %s672_s2 = inlined_call_operand.hbm [shape: f32[16,256], index: 2, kind: output, shape index: {}]  }
   0x1   :  { %7 = sst [smem:[#allocation2]] %s670_s0 }
   0x2   :  { %8 = vsyncpa [#allocation4], 0 }
   0x3   :  { %10 = vsyncpa [#allocation4 + $0x1], 0 }
   0x4   :  { %11 = vsyncpa [#allocation5], 0 }
   0x5   :  { %13 = vsyncpa [#allocation5 + $0x1], 0  ;;  %s545_s11 = smov 0   ;;  %s547_s12 = smov 0  }
   0x6   :  { %s549_s13 = smov 0   ;;  %s551_s14 = smov 0  }
   0x7   :  { %s553_s15 = smov 0   ;;  %s555_s16 = smov 0  }
   0x8 LB: > { %s331_s0 = sadd.s32 4294967295, %s525_s16   ;;  %s332_s17 = sadd.s32 4294967294, %s525_s16   ;;  %s525_s16 = sphi %s555_s16, %s19_s16   ;;  %s521_s15 = sphi %s553_s15, %s681_s15   ;;  %s517_s14 = sphi %s551_s14, %s680_s14   ;;  %s513_s13 = sphi %s549_s13, %s679_s13   ;;  %s509_s12 = sphi %s547_s12, %s678_s12   ;;  %s505_s11 = sphi %s545_s11, %s677_s11  }
   0x9   : > { %s31_s18 = sadd.s32 1, %s521_s15  ;;  %s61_s19 = sadd.s32 1, %s513_s13 }
   0xa   : > { %p33_p0 = scmp.ge.s32.totalorder %s31_s18, 2  ;;  %p68_p1 = scmp.ne.s32.totalorder %s513_s13, %s509_s12 }
   0xb   : > { %p69_p2 = scmp.eq.s32.totalorder %s525_s16, 0  ;;  %p74_p3 = scmp.ne.s32.totalorder %s509_s12, %s505_s11 }
   0xc   : > { %s683_s18 = smov (%p33_p0, %s31_s18), 0  ;;  %p75_p5 = scmp.eq.s32.totalorder %s331_s0, 0 }
   0xd   : > { %p586_p4 = por %p69_p2, %p68_p1  ;;  %s56_s21 = ssub.s32 %s521_s15, %s683_s18 }
   0xe   : > { %p100_p6 = scmp.eq.s32.totalorder %s331_s0, 1  ;;  %p59_p7 = scmp.eq.s32.totalorder %s56_s21, 0 }
   0xf   : > { %p592_p8 = por %p75_p5, %p74_p3  ;;  %p106_p10 = scmp.eq.s32.totalorder %s332_s17, 1 }
  0x10   : > { %p596_p9 = por %p100_p6, %p68_p1  ;;  %p334_p12 = scmp.ge.s32.totalorder %s525_s16, 2 }
  0x11   : > { %s601_s24 = scalar_select %p59_p7, %s513_s13, %s61_s19  }
  0x12   : > { %p603_p11 = por %p106_p10, %p74_p3  ;;  %p363_p13 = scmp.lt.s32.totalorder %s525_s16, 2 }
  0x13   : > { %s129_s26 = sand.u32 1, %s513_s13   ;;  %s349_s28 = sshll.u32 %s521_s15, 4 }
  0x14   : > { %s335_s27 = sshll.u32 %s129_s26, 4  ;;  %s140_s3 = scalar_lea.hbm %s671_s1, %s349_s28 }
  0x15   : > { %s133_s4 = scalar_lea.vmem [#allocation3], %s335_s27  ;;  %s142_s6 = sshll.u32 %s140_s3, 4  ;;  %s143_s6 = int_to_ptr.hbm [resolvable:$true] %s142_s6 }
  0x16   : > { %s144_s5 = sshll.u32 %s133_s4, 4  ;;  %p356_p0 = pnand %p363_p13, %p586_p4  ;;  %s145_s5 = int_to_ptr.vmem [resolvable:$true] %s144_s5 }
  0x17   : > { %p338_p1 = scmp.ge.s32.totalorder %s525_s16, 1  ;;  %p149_p2 = scmp.lt.s32.totalorder %s525_s16, 3 }
  0x18   : > { %s130_s7 = scalar_lea.sflag [#allocation4], %s129_s26 }
  0x19   : > { %358 = dma.hbm_to_vmem [thread:$0]  (!%p356_p0), %s143_s6, 256, %s145_s5, %s130_s7  }
  0x1a   : > { %p150_p3 = pnand %p338_p1, %p149_p2 }
  0x1b   : > { %s619_s8 = sand.u32 (!%p150_p3), 1, %s509_s12  }
  0x1c   : > { %153 = sbr.rel (%p150_p3) target bundleno = 63 (0x3f), region = 28  ;;  %s339_s9 = sshll.u32 (!%p150_p3), %s619_s8, 4 }
  0x1d   : > { %s156_s10 = scalar_lea.sflag (!%p150_p3), [#allocation4], %s619_s8  ;;  %s159_s0 = scalar_lea.vmem (!%p150_p3), [#allocation3], %s339_s9 }
  0x21   : > { %496 = dma.done.wait (%p592_p8), %s156_s10, 256  }
  0x22   : > { %498 = vsyncadd (%p592_p8), %s156_s10, 4294967040  ;;  %v183_v0 = vlaneseq  ;;  %s341_s17 = sshll.u32 %s517_s14, 3  ;;  %s198_s19 = sld [smem:[#allocation2]]  ;;  %v220_v21 = vld [vmem:[%s159_s0] sm:$0xff]  ;;  %v221_v23 = vld [vmem:[%s159_s0 + $0x8] sm:$0xff] }
  0x23   : > { %v186_v1 = vstv %s341_s17  ;;  %s350_s20 = sshll.u32 %s517_s14, 4  ;;  %v222_v26 = vmul.f32 4.0, %v220_v21  ;;  %s180_s27 = scalar_lea.vmem [#allocation6], %s339_s9  ;;  %v223_v27 = vmul.f32 4.0, %v221_v23 }
  0x24   : > { %v184_v2 = vshrl.u32 %v183_v0, 7  ;;  %v189_v3 = vand.u32 127, %v183_v0  ;;  %s242_s26 = scalar_lea.hbm %s672_s2, %s350_s20  ;;  %s244_s28 = sshll.u32 %s180_s27, 4  ;;  %s245_s28 = int_to_ptr.vmem [resolvable:$true] %s244_s28 }
  0x25   : > { %s246_s14 = sshll.u32 %s242_s26, 4  ;;  %s229_s29 = scalar_lea.sflag [#allocation5], %s619_s8  ;;  %s247_s14 = int_to_ptr.hbm [resolvable:$true] %s246_s14 }
  0x26   : > { %v187_v4 = vadd.s32 %v186_v1, %v184_v2  ;;  %v196_v5 = vmul.u32 2246822507, %v189_v3  ;;  %v190_v6 = vadd.s32 128, %v189_v3  ;;  %s457_s30 = sshra.s32 %s247_s14, 4  ;;  %s463_s6 = scalar_lea.hbm %s672_s2, 32  ;;  %s458_s30 = int_to_ptr.hbm [resolvable:$true] %s457_s30 }
  0x27   : > { %s459_s3 = scalar_lea.hbm %s458_s30, 16  ;;  %p464_p7 = scmp.lt.s32.totalorder %s458_s30, %s672_s2 }
  0x28   : > { %v195_v7 = vmul.u32 2654435769, %v187_v4  ;;  %v197_v8 = vmul.u32 2246822507, %v190_v6  ;;  %v199_v9 = vstv %s198_s19  ;;  %p460_p4 = scmp.ne.s32.totalorder %s458_s30, %s459_s3  ;;  %p465_p8 = scmp.lt.s32.totalorder %s463_s6, %s459_s3 }
  0x29   : > { %v200_v10 = vadd.s32 %v199_v9, %v196_v5 }
  0x2a   : > { %v201_v11 = vadd.s32 %v199_v9, %v197_v8  ;;  %p461_p5 = pnand %p460_p4, %p596_p9  ;;  %p466_p10 = por %p465_p8, %p464_p7 }
  0x2b   : > { %v202_v12 = vadd.s32 %v200_v10, %v195_v7 }
  0x2c   : > { %v203_v13 = vadd.s32 %v201_v11, %v195_v7  ;;  %p462_p6 = pneg %p461_p5 }
  0x2d   : > { %v204_v14 = vshrl.u32 %v202_v12, 16 }
  0x2e   : > { %v205_v15 = vshrl.u32 %v203_v13, 16  ;;  %p467_p13 = pnand %p466_p10, %p462_p6 }
  0x2f   : > { %v206_v16 = vxor.u32 %v204_v14, %v202_v12 }
  0x30   : > { %v207_v17 = vxor.u32 %v205_v15, %v203_v13 }
  0x31   : > { %v208_v18 = vmul.u32 2146121005, %v206_v16 }
  0x32   : > { %v209_v19 = vmul.u32 2146121005, %v207_v17 }
  0x33   : > { %v210_v20 = vshrl.u32 %v208_v18, 15 }
  0x34   : > { %v211_v22 = vshrl.u32 %v209_v19, 15 }
  0x35   : > { %v212_v24 = vxor.u32 %v210_v20, %v208_v18 }
  0x36   : > { %v213_v25 = vxor.u32 %v211_v22, %v209_v19 }
  0x37   : > { %v342_v28 = vxor.u32 2147483648, %v212_v24 }
  0x38   : > { %v343_v29 = vxor.u32 2147483648, %v213_v25 }
  0x39   : > { %vm216_vm0 = vcmp.lt.s32.totalorder %v342_v28, 3221225472 }
  0x3a   : > { %vm219_vm1 = vcmp.lt.s32.totalorder %v343_v29, 3221225472  ;;  %v224_v30 = vsel %vm216_vm0, %v222_v26, 0.0 }
  0x3b   : > { %v225_v31 = vsel %vm219_vm1, %v223_v27, 0.0  ;;  %226 = vst [vmem:[%s180_s27] sm:$0xff] %v224_v30 }
  0x3c   : > { %227 = vst [vmem:[%s180_s27 + $0x8] sm:$0xff] %v225_v31 }
  0x3d   : > { %470 = shalt.err (!%p467_p13)
}
  0x3e   : > { %353 = dma.vmem_to_hbm [thread:$0]  (%p596_p9), %s245_s28, 256, %s247_s14, %s229_s29  }
  0x3f PF: > { %s258_s8 = sand.u32 1, %s505_s11   ;;  %p360_p0 = pnand %p334_p12, %p603_p11 }
  0x40   : > { %s259_s10 = scalar_lea.sflag [#allocation5], %s258_s8 }
  0x41   : > { %p361_p1 = pneg %p360_p0 }
  0x43   : > { %500 = dma.done.wait (%p361_p1), %s259_s10, 256  }
  0x44   : > { %502 = vsyncadd (%p361_p1), %s259_s10, 4294967040  ;;  %s19_s16 = sadd.s32 1, %s525_s16   ;;  %s677_s11 = smov %s509_s12 }
  0x45   : > { %p16_p2 = scmp.ge.s32.totalorder %s19_s16, 4   ;;  %s678_s12 = smov %s513_s13 }
  0x46   : > { %s679_s13 = smov %s601_s24  ;;  %s680_s14 = smov %s521_s15 }
  0x47   : > { %s681_s15 = smov %s683_s18  ;;  %18 = sbr.rel (!%p16_p2) target bundleno = 8 (0x8), region = 73 }
  0x4c   :  { %265 = vsyncpa [#allocation4], 1 }
  0x4d   :  { %267 = vsyncpa [#allocation4 + $0x1], 1 }
  0x4e   :  { %268 = vsyncpa [#allocation5], 1 }
  0x4f   :  { %270 = vsyncpa [#allocation5 + $0x1], 1 }

</bundles_post_ra>
